<compile_context>
chip_gen: v7x
topology: tpu7x:2x2x1
jax: 0.10.0
libtpu: 0.0.40
codegen_flags: <defaults>
</compile_context>

<pallas_src>
import functools
import math

import jax
import jax.numpy as jnp
from jax.experimental import pallas as pl
from jax.experimental.pallas import tpu as pltpu

_EPS = 1e-5


def _round_up(a, b):
    return -(-a // b) * b


# ----------------------------- kernels -----------------------------

def _bfln_kernel_dense(x_ref, w_ref, o_ref, *, eps):
    """C already lane-aligned (or fallback): plain per-row reduction (no MXU)."""
    x = x_ref[...].astype(jnp.float32)                     # (TR, C)
    mu = jnp.mean(x, axis=-1, keepdims=True)
    ms = jnp.mean(x * x, axis=-1, keepdims=True)
    var = ms - mu * mu                                     # unbiased=False (one-pass; fine w/ eps at activation scale)
    inv = jax.lax.rsqrt(var + eps)                         # EUP
    o_ref[...] = (x * inv * w_ref[...].astype(jnp.float32)).astype(o_ref.dtype)


def _bfln_kernel_packed(x_ref, w_ref, seg_ref, segt_ref, o_ref, *, inv_c, eps):
    """k original rows packed along the lane axis; segmented stats via block-diag ones on the MXU."""
    x = x_ref[...].astype(jnp.float32)                     # (TR, K*C), lane-dense
    seg = seg_ref[...]                                     # (K*C, K): seg[i, j] = 1 iff i // C == j
    segt = segt_ref[...]                                   # (K, K*C): broadcast-back matrix
    hp = jax.lax.Precision.HIGHEST                         # keep f32 accuracy through the MXU
    s1 = jnp.dot(x, seg, precision=hp, preferred_element_type=jnp.float32)      # (TR, K) row sums
    s2 = jnp.dot(x * x, seg, precision=hp, preferred_element_type=jnp.float32)  # (TR, K) row sum of squares
    mu = s1 * inv_c
    var = s2 * inv_c - mu * mu                             # unbiased=False
    inv = jax.lax.rsqrt(var + eps)                         # (TR, K), EUP
    inv_full = jnp.dot(inv, segt, precision=hp, preferred_element_type=jnp.float32)  # (TR, K*C)
    o_ref[...] = (x * inv_full * w_ref[...].astype(jnp.float32)).astype(o_ref.dtype)


# ----------------------------- wrapper -----------------------------

def biasfree_layernorm(x, weight, *,
                       target_block_bytes=2 * 1024 * 1024,
                       vmem_limit_bytes=32 * 1024 * 1024):
    """x: (..., C), weight: (C,). Returns same shape & dtype as x."""
    orig_shape = x.shape
    C = int(orig_shape[-1])
    assert weight.shape == (C,)
    x2 = x.reshape(-1, C)
    rows = int(x2.shape[0])

    # ---- lane packing factor: smallest k with (k*C) % 128 == 0 ----
    k = 128 // math.gcd(C, 128)
    if k > 64 or k > rows:      # too much padding / too-wide packed row -> fall back
        k = 1
    KC = k * C

    prows = _round_up(rows, k) // k                       # packed rows before tile padding

    # ---- row tile: biggest sublane-aligned tile under the VMEM budget ----
    tr = max(8, (target_block_bytes // (KC * 4)) // 8 * 8)
    tr = min(tr, _round_up(prows, 8))
    # keep >= 2 grid steps when there is enough work (megacore / v7x 2-TC split)
    if prows > 16 and _round_up(prows, tr) // tr < 2:
        tr = max(8, _round_up(-(-prows // 2), 8))

    prows_pad = _round_up(prows, tr)
    rows_pad = prows_pad * k
    if rows_pad != rows:
        x2 = jnp.pad(x2, ((0, rows_pad - rows), (0, 0)))   # zero rows: var=0 -> finite, sliced off later
    xp = x2.reshape(prows_pad, KC)                         # free view of contiguous memory

    grid = (prows_pad // tr,)

    cost = pl.CostEstimate(
        flops=int(12 * rows_pad * C),
        transcendentals=int(rows_pad),
        bytes_accessed=int(2 * rows_pad * C * x.dtype.itemsize),
    )
    cparams = pltpu.CompilerParams(
        dimension_semantics=("parallel",),
        vmem_limit_bytes=int(vmem_limit_bytes),
    )

    if k == 1:
        w2 = weight.reshape(1, C)
        kernel = functools.partial(_bfln_kernel_dense, eps=_EPS)
        out = pl.pallas_call(
            kernel,
            out_shape=jax.ShapeDtypeStruct((prows_pad, KC), x.dtype),
            grid_spec=pltpu.PrefetchScalarGridSpec(
                num_scalar_prefetch=0,
                grid=grid,
                in_specs=[
                    pl.BlockSpec((tr, KC), lambda i: (i, 0)),
                    pl.BlockSpec((1, KC), lambda i: (0, 0)),
                ],
                out_specs=pl.BlockSpec((tr, KC), lambda i: (i, 0)),
            ),
            compiler_params=cparams,
            cost_estimate=cost,
        )(xp, w2)
    else:
        w_packed = jnp.tile(weight, k).reshape(1, KC)      # weight[i % C]
        seg_ids = jnp.arange(KC, dtype=jnp.int32) // C
        seg = (seg_ids[:, None] == jnp.arange(k, dtype=jnp.int32)[None, :]).astype(jnp.float32)  # (KC, k)
        segt = jnp.transpose(seg)                                                                # (k, KC)
        kernel = functools.partial(_bfln_kernel_packed, inv_c=1.0 / C, eps=_EPS)
        out = pl.pallas_call(
            kernel,
            out_shape=jax.ShapeDtypeStruct((prows_pad, KC), x.dtype),
            grid_spec=pltpu.PrefetchScalarGridSpec(
                num_scalar_prefetch=0,
                grid=grid,
                in_specs=[
                    pl.BlockSpec((tr, KC), lambda i: (i, 0)),
                    pl.BlockSpec((1, KC), lambda i: (0, 0)),
                    pl.BlockSpec((KC, k), lambda i: (0, 0)),
                    pl.BlockSpec((k, KC), lambda i: (0, 0)),
                ],
                out_specs=pl.BlockSpec((tr, KC), lambda i: (i, 0)),
            ),
            compiler_params=cparams,
            cost_estimate=cost,
        )(xp, w_packed, seg, segt)

    out = out.reshape(rows_pad, C)[:rows]
    return out.reshape(orig_shape)


def biasfree_layernorm_ref(x, weight):
    x32 = x.astype(jnp.float32)
    mu = jnp.mean(x32, axis=-1, keepdims=True)
    var = jnp.mean((x32 - mu) ** 2, axis=-1, keepdims=True)
    return (x32 / jnp.sqrt(var + _EPS) * weight).astype(x.dtype)


if __name__ == "__main__":
    key = jax.random.PRNGKey(0)
    k1, k2, k3 = jax.random.split(key, 3)

    # Main case (packed path, C=32 -> k=4, lane-dense 128-wide packed rows).
    B, S, C = 2, 64, 32
    x = jax.random.normal(k1, (B, S, C), dtype=jnp.float32)
    # Module __init__: weight = ones(C); perturb deterministically so the test is non-trivial.
    weight = jnp.ones((C,), jnp.float32) + 0.01 * jnp.arange(C, dtype=jnp.float32)
    out = jax.block_until_ready(biasfree_layernorm(x, weight))
    ref = biasfree_layernorm_ref(x, weight)
    assert out.shape == x.shape and out.dtype == x.dtype
    err = float(jnp.max(jnp.abs(out - ref)))
    assert err < 1e-4, f"packed-path mismatch vs reference: {err}"

    # Lane-aligned case (k == 1 path, C multiple of 128).
    C2 = 128
    x2 = jax.random.normal(k2, (2, 8, C2), dtype=jnp.float32)
    w2 = jnp.ones((C2,), jnp.float32)
    o2 = jax.block_until_ready(biasfree_layernorm(x2, w2))
    r2 = biasfree_layernorm_ref(x2, w2)
    assert float(jnp.max(jnp.abs(o2 - r2))) < 1e-4, "dense-path mismatch vs reference"

    # Odd row count + awkward C (exercises row padding and the k fallback).
    C3 = 48
    x3 = jax.random.normal(k3, (1, 7, C3), dtype=jnp.float32)
    w3 = jnp.ones((C3,), jnp.float32) + 0.02 * jnp.arange(C3, dtype=jnp.float32)
    o3 = jax.block_until_ready(biasfree_layernorm(x3, w3))
    r3 = biasfree_layernorm_ref(x3, w3)
    assert o3.shape == x3.shape
    assert float(jnp.max(jnp.abs(o3 - r3))) < 1e-4, "padded-path mismatch vs reference"

    print("KERNEL_OK")
</pallas_src>

<mosaic_0001>
module attributes {stable_mosaic.version = 11 : i64} {
  func.func @_bfln_kernel_packed(%arg0: i32, %arg1: memref<16x128xf32, #tpu.memory_space<vmem>>, %arg2: memref<1x128xf32, #tpu.memory_space<vmem>>, %arg3: memref<128x4xf32, #tpu.memory_space<vmem>>, %arg4: memref<4x128xf32, #tpu.memory_space<vmem>>, %arg5: memref<16x128xf32, #tpu.memory_space<vmem>>) attributes {dimension_semantics = [#tpu.dimension_semantics<parallel>], iteration_bounds = array<i64: 2>, scalar_prefetch = 0 : i64, scratch_operands = 0 : i64, tpu.core_type = #tpu.core_type<tc>, window_params = [{transform_indices = @transform_0, window_bounds = array<i64: 16, 128>}, {pipeline_mode = #tpu.pipeline_mode<synchronous>, transform_indices = @transform_1, window_bounds = array<i64: 1, 128>}, {pipeline_mode = #tpu.pipeline_mode<synchronous>, transform_indices = @transform_2, window_bounds = array<i64: 128, 4>}, {pipeline_mode = #tpu.pipeline_mode<synchronous>, transform_indices = @transform_3, window_bounds = array<i64: 4, 128>}, {transform_indices = @transform_4, window_bounds = array<i64: 16, 128>}]} {
    %c0 = arith.constant 0 : index
    %c0_0 = arith.constant 0 : index
    %0 = vector.load %arg1[%c0, %c0_0] : memref<16x128xf32, #tpu.memory_space<vmem>>, vector<16x128xf32>
    %c0_1 = arith.constant 0 : index
    %c0_2 = arith.constant 0 : index
    %1 = vector.load %arg3[%c0_1, %c0_2] : memref<128x4xf32, #tpu.memory_space<vmem>>, vector<128x4xf32>
    %c0_3 = arith.constant 0 : index
    %c0_4 = arith.constant 0 : index
    %2 = vector.load %arg4[%c0_3, %c0_4] : memref<4x128xf32, #tpu.memory_space<vmem>>, vector<4x128xf32>
    %cst = arith.constant dense<0.000000e+00> : vector<16x4xf32>
    %3 = tpu.matmul %0, %1, %cst {dimension_numbers = #tpu.dot_dimension_numbers<[1], [0], [0], [1], [0, 0, 1, 1], [], []>, precision = #tpu.contract_precision<fp32>} : vector<16x128xf32>, vector<128x4xf32>, vector<16x4xf32> -> vector<16x4xf32>
    %4 = arith.mulf %0, %0 : vector<16x128xf32>
    %cst_5 = arith.constant dense<0.000000e+00> : vector<16x4xf32>
    %5 = tpu.matmul %4, %1, %cst_5 {dimension_numbers = #tpu.dot_dimension_numbers<[1], [0], [0], [1], [0, 0, 1, 1], [], []>, precision = #tpu.contract_precision<fp32>} : vector<16x128xf32>, vector<128x4xf32>, vector<16x4xf32> -> vector<16x4xf32>
    %cst_6 = arith.constant 3.125000e-02 : f32
    %6 = vector.broadcast %cst_6 : f32 to vector<16x4xf32>
    %7 = arith.mulf %3, %6 : vector<16x4xf32>
    %cst_7 = arith.constant 3.125000e-02 : f32
    %8 = vector.broadcast %cst_7 : f32 to vector<16x4xf32>
    %9 = arith.mulf %5, %8 : vector<16x4xf32>
    %10 = arith.mulf %7, %7 : vector<16x4xf32>
    %11 = arith.subf %9, %10 : vector<16x4xf32>
    %cst_8 = arith.constant 9.99999974E-6 : f32
    %12 = vector.broadcast %cst_8 : f32 to vector<16x4xf32>
    %13 = arith.addf %11, %12 : vector<16x4xf32>
    %14 = math.rsqrt %13 : vector<16x4xf32>
    %cst_9 = arith.constant dense<0.000000e+00> : vector<16x128xf32>
    %15 = tpu.matmul %14, %2, %cst_9 {dimension_numbers = #tpu.dot_dimension_numbers<[1], [0], [0], [1], [0, 0, 1, 1], [], []>, precision = #tpu.contract_precision<fp32>} : vector<16x4xf32>, vector<4x128xf32>, vector<16x128xf32> -> vector<16x128xf32>
    %16 = arith.mulf %0, %15 : vector<16x128xf32>
    %c0_10 = arith.constant 0 : index
    %c0_11 = arith.constant 0 : index
    %17 = vector.load %arg2[%c0_10, %c0_11] : memref<1x128xf32, #tpu.memory_space<vmem>>, vector<1x128xf32>
    %18 = vector.broadcast %17 : vector<1x128xf32> to vector<16x128xf32>
    %19 = arith.mulf %16, %18 : vector<16x128xf32>
    %c0_12 = arith.constant 0 : index
    %c0_13 = arith.constant 0 : index
    %20 = vector.load %arg5[%c0_12, %c0_13] : memref<16x128xf32, #tpu.memory_space<vmem>>, vector<16x128xf32>
    tpu.vector_store %arg5[%c0_12, %c0_13], %19 {strides = array<i32>} : memref<16x128xf32, #tpu.memory_space<vmem>>, vector<16x128xf32>,
    return
  }
  func.func @transform_0(%arg0: i32) -> (i32, i32) {
    %c0_i32 = arith.constant 0 : i32
    %c0_i32_0 = arith.constant 0 : i32
    return %arg0, %c0_i32 : i32, i32
  }
  func.func @transform_1(%arg0: i32) -> (i32, i32) {
    %c0_i32 = arith.constant 0 : i32
    %c0_i32_0 = arith.constant 0 : i32
    %c0_i32_1 = arith.constant 0 : i32
    return %c0_i32, %c0_i32_0 : i32, i32
  }
  func.func @transform_2(%arg0: i32) -> (i32, i32) {
    %c0_i32 = arith.constant 0 : i32
    %c0_i32_0 = arith.constant 0 : i32
    %c0_i32_1 = arith.constant 0 : i32
    return %c0_i32, %c0_i32_0 : i32, i32
  }
  func.func @transform_3(%arg0: i32) -> (i32, i32) {
    %c0_i32 = arith.constant 0 : i32
    %c0_i32_0 = arith.constant 0 : i32
    %c0_i32_1 = arith.constant 0 : i32
    return %c0_i32, %c0_i32_0 : i32, i32
  }
  func.func @transform_4(%arg0: i32) -> (i32, i32) {
    %c0_i32 = arith.constant 0 : i32
    %c0_i32_0 = arith.constant 0 : i32
    return %arg0, %c0_i32 : i32, i32
  }
}

</mosaic_0001>

<bundles_post_ra>
// kernel: tpu_custom_call.1
= control target key start
LH: loop header
LB: loop body
LE: loop exit
PB: predicated region body
PF: predicated region fallthrough
CT: control target
= control target key end

     0   :  { %9 = vsyncpa [#allocation3], 0  ;;  %s3984_s0 = inlined_call_operand.vmem [shape: f32[32,128], index: 0, kind: input, shape index: {}]   ;;  %s3985_s1 = inlined_call_operand.vmem [shape: f32[1,128], index: 1, kind: input, shape index: {}]   ;;  %s3986_s2 = inlined_call_operand.vmem [shape: f32[128,4], index: 2, kind: input, shape index: {}]   ;;  %s3987_s3 = inlined_call_operand.vmem [shape: f32[4,128], index: 3, kind: input, shape index: {}]   ;;  %s3988_s4 = inlined_call_operand.hbm [shape: f32[32,128], index: 4, kind: output, shape index: {}]  }
   0x1   :  { %11 = vsyncpa [#allocation3 + $0x1], 0  ;;  %s3438_s15 = smov 0   ;;  %s3440_s16 = smov 0  }
   0x2   :  { %s3442_s17 = smov 0   ;;  %s3444_s18 = smov 0  }
   0x3 LB: > { %s3459_s19 = sadd.s32 4294967295, %s3408_s18   ;;  %s2189_s20 = sadd.s32 4294967294, %s3408_s18   ;;  %s3408_s18 = sphi %s3444_s18, %s4002_s18   ;;  %s3404_s17 = sphi %s3442_s17, %s4001_s17   ;;  %s3400_s16 = sphi %s3440_s16, %s4000_s16   ;;  %s3396_s15 = sphi %s3438_s15, %s3999_s15  }
   0x4   : > { %s3463_s21 = sadd.s32 1, %s3408_s18   ;;  %s113_s22 = sadd.s32 1, %s3404_s17 }
   0x5   : > { %s110_s23 = ssub.s32 %s3408_s18, %s3463_s21  ;;  %p123_p0 = scmp.ne.s32.totalorder %s3404_s17, %s3400_s16 }
   0x6   : > { %p111_p1 = scmp.eq.s32.totalorder %s110_s23, 0  ;;  %p124_p2 = scmp.eq.s32.totalorder %s3459_s19, 1 }
   0x7   : > { %p129_p3 = scmp.ne.s32.totalorder %s3400_s16, %s3396_s15  ;;  %p130_p4 = scmp.eq.s32.totalorder %s2189_s20, 1 }
   0x8   : > { %s3474_s24 = scalar_select %p111_p1, %s3404_s17, %s113_s22  }
   0x9   : > { %p3476_p5 = por %p124_p2, %p123_p0  ;;  %p3480_p6 = por %p130_p4, %p129_p3 }
   0xa   : > { %p2192_p7 = scmp.ge.s32.totalorder %s3408_s18, 1  ;;  %p166_p8 = scmp.lt.s32.totalorder %s3408_s18, 3 }
   0xc   : > { %p167_p9 = pnand %p2192_p7, %p166_p8 }
   0xd   : > { %v201_v0 = vld [vmem:[%s3986_s2] sm:$0xff] (!%p167_p9)  ;;  %v202_v1 = vld [vmem:[%s3986_s2 + $0x8] sm:$0xff] (!%p167_p9)  ;;  %v203_v2 = vld [vmem:[%s3986_s2 + $0x10] sm:$0xff] (!%p167_p9)  ;;  %s2194_s7 = sshll.u32 (!%p167_p9), %s3459_s19, 1  ;;  %vm1607_vm0 = vcmask (!%p167_p9), 1043456   ;;  %vm1600_vm1 = vcmask (!%p167_p9), 31744  }
   0xe   : > { %170 = sbr.rel (%p167_p9) target bundleno = 704 (0x2c0), region = 36  ;;  %v219_v3 = vand.u32 (!%p167_p9), 4294901760, %v201_v0  ;;  %v222_v4 = vand.u32 (!%p167_p9), 4294901760, %v202_v1  ;;  %v204_v5 = vld [vmem:[%s3986_s2 + $0x18] sm:$0xff] (!%p167_p9)  ;;  %v225_v6 = vand.u32 (!%p167_p9), 4294901760, %v203_v2  ;;  %v3502_v7 = vld [vmem:[%s3986_s2 + $0x20] sm:$0xff] (!%p167_p9) }
   0xf   : > { %v3507_v8 = vld [vmem:[%s3986_s2 + $0x28] sm:$0xff] (!%p167_p9)  ;;  %v228_v9 = vand.u32 (!%p167_p9), 4294901760, %v204_v5  ;;  %v231_v11 = vand.u32 (!%p167_p9), 4294901760, %v3502_v7  ;;  %v3518_v14 = vld [vmem:[%s3986_s2 + $0x30] sm:$0xff] (!%p167_p9)  ;;  %v3523_v15 = vld [vmem:[%s3986_s2 + $0x38] sm:$0xff] (!%p167_p9)  ;;  %p193_p10 = scmp.lt.s32.totalorder (!%p167_p9), %s2194_s7, 3 }
  0x10   : > { %v3509_v10 = vpack.c.bf16 (!%p167_p9), %v222_v4, %v219_v3  ;;  %v234_v12 = vand.u32 (!%p167_p9), 4294901760, %v3507_v8  ;;  %v237_v17 = vand.u32 (!%p167_p9), 4294901760, %v3518_v14  ;;  %v240_v18 = vand.u32 (!%p167_p9), 4294901760, %v3523_v15  ;;  %v3542_v19 = vld [vmem:[%s3986_s2 + $0x40] sm:$0xff] (!%p167_p9)  ;;  %v3547_v20 = vld [vmem:[%s3986_s2 + $0x48] sm:$0xff] (!%p167_p9)  ;;  %v3571_v26 = vld [vmem:[%s3986_s2 + $0x50] sm:$0xff] (!%p167_p9) }
  0x11   : > { %v3513_v13 = vpack.c.bf16 (!%p167_p9), %v228_v9, %v225_v6  ;;  %v243_v21 = vand.u32 (!%p167_p9), 4294901760, %v3542_v19  ;;  %v246_v25 = vand.u32 (!%p167_p9), 4294901760, %v3547_v20  ;;  %v3581_v29 = vld [vmem:[%s3986_s2 + $0x58] sm:$0xff] (!%p167_p9)  ;;  %v3583_v30 = vsub.f32 (!%p167_p9), %v201_v0, %v219_v3  ;;  %v213_v42 = vld [vmem:[%s3986_s2 + $0x60] sm:$0xff] (!%p167_p9)  ;;  %v214_v45 = vld [vmem:[%s3986_s2 + $0x68] sm:$0xff] (!%p167_p9)  ;;  %s189_s6 = sand.u32 (!%p167_p9), 1, %s3400_s16  }
  0x12   : > { %2888 = vmatprep.subr.bf16.mxu0 (!%p167_p9), %v3509_v10  ;;  %3080 = vmatprep.subr.bf16.mxu1 (!%p167_p9), %v3509_v10  ;;  %v3535_v16 = vpack.c.bf16 (!%p167_p9), %v234_v12, %v231_v11  ;;  %v3565_v24 = vpack.c.bf16 (!%p167_p9), %v240_v18, %v237_v17  ;;  %v3585_v31 = vsub.f32 (!%p167_p9), %v202_v1, %v222_v4  ;;  %v249_v37 = vand.u32 (!%p167_p9), 4294901760, %v3571_v26  ;;  %v215_v48 = vld [vmem:[%s3986_s2 + $0x70] sm:$0xff] (!%p167_p9)  ;;  %v216_v49 = vld [vmem:[%s3986_s2 + $0x78] sm:$0xff] (!%p167_p9)  ;;  %s2193_s8 = sshll.u32 (!%p167_p9), %s189_s6, 4  ;;  %s2202_s12 = sshll.u32 (!%p167_p9), %s3459_s19, 8 }
  0x13   : > { %2890 = vmatpush3.bf16.msra.mxu0 (!%p167_p9), %v3509_v10  ;;  %3082 = vmatpush3.bf16.msra.mxu1 (!%p167_p9), %v3509_v10  ;;  %v3595_v35 = vsub.f32 (!%p167_p9), %v203_v2, %v225_v6  ;;  %v3597_v36 = vsub.f32 (!%p167_p9), %v204_v5, %v228_v9  ;;  %v3613_v40 = vpack.c.bf16 (!%p167_p9), %v246_v25, %v243_v21  ;;  %v252_v41 = vand.u32 (!%p167_p9), 4294901760, %v3581_v29  ;;  %s191_s10 = scalar_lea.vmem (!%p167_p9), [#allocation2], %s2193_s8  ;;  %s3941_s20 = scalar_lea.hbm (!%p167_p9), %s3988_s4, %s2202_s12 }
  0x14   : > { %2892 = vmatprep.subr.bf16.mxu0 (!%p167_p9), %v3513_v13  ;;  %3084 = vmatprep.subr.bf16.mxu1 (!%p167_p9), %v3513_v13  ;;  %v322_v46 = vand.u32 (!%p167_p9), 4294901760, %v3583_v30  ;;  %v329_v47 = vand.u32 (!%p167_p9), 4294901760, %v3585_v31  ;;  %v255_v54 = vand.u32 (!%p167_p9), 4294901760, %v213_v42  ;;  %v258_v58 = vand.u32 (!%p167_p9), 4294901760, %v214_v45  ;;  %s2127_s11 = sshll.u32 (!%p167_p9), %s191_s10, 4  ;;  %s3943_s22 = scalar_lea.sflag (!%p167_p9), [#allocation3], %s189_s6  ;;  %s3936_s11 = int_to_ptr.vmem [resolvable:$true] %s2127_s11 }
  0x15   : > { %s4004_s7 = smov (!%p193_p10, %s2194_s7), 3  ;;  %v336_v52 = vand.u32 4294901760, %v3595_v35  ;;  %v343_v53 = vand.u32 4294901760, %v3597_v36  ;;  %v3653_v57 = vpack.c.bf16 %v252_v41, %v249_v37  ;;  %v261_v61 = vand.u32 4294901760, %v215_v48  ;;  %s3346_s19 = scalar_lea.vmem %s3936_s11, 256 }
  0x16   : > { %s2195_s5 = sshll.u32 %s4004_s7, 3  ;;  %v264_v62 = vand.u32 4294901760, %v216_v49  ;;  %v323_v63 = vsub.f32 %v3583_v30, %v322_v46  ;;  %v3664_v0 = vsub.f32 %v3502_v7, %v231_v11  ;;  %v330_v1 = vsub.f32 %v3585_v31, %v329_v47  ;;  %p3347_p11 = scmp.ne.s32.totalorder %s3936_s11, %s3346_s19 }
  0x17   : > { %s196_s9 = scalar_lea.vmem %s3984_s0, %s2195_s5  ;;  %2894 = vmatpush3.bf16.msra.mxu0 %v3513_v13  ;;  %3086 = vmatpush3.bf16.msra.mxu1 %v3513_v13  ;;  %v337_v3 = vsub.f32 %v3595_v35, %v336_v52  ;;  %v344_v4 = vsub.f32 %v3597_v36, %v343_v53  ;;  %v3682_v7 = vsub.f32 %v3507_v8, %v234_v12  ;;  %s3410_s23 = smov [#allocation2]  }
  0x18   : > { %v3555_v22 = vld [vmem:[%s196_s9] sm:$0xff]  ;;  %v3557_v23 = vld [vmem:[%s196_s9 + $0x8] sm:$0xff]  ;;  %2896 = vmatprep.subr.bf16.mxu0 %v3535_v16  ;;  %3088 = vmatprep.subr.bf16.mxu1 %v3535_v16  ;;  %v3687_v9 = vsub.f32 %v3518_v14, %v237_v17  ;;  %v3691_v11 = vpack.c.bf16 %v258_v58, %v255_v54  ;;  %v3698_v8 = vsub.f32 %v3523_v15, %v240_v18  ;;  %v331_v12 = vand.u32 4294901760, %v330_v1  ;;  %p3348_p12 = pnand %p3347_p11, %p3476_p5  ;;  %s3350_s27 = sshll.u32 %s3410_s23, 4  ;;  %s3351_s27 = int_to_ptr.vmem [resolvable:$false] %s3350_s27 }
  0x19   : > { %v3574_v27 = vand.u32 4294901760, %v3555_v22  ;;  %v902_v28 = vmul.f32 %v3555_v22, %v3555_v22  ;;  %v903_v32 = vmul.f32 %v3557_v23, %v3557_v23  ;;  %v3603_v38 = vand.u32 4294901760, %v3557_v23  ;;  %s3352_s28 = scalar_lea.vmem %s3351_s27, 512  ;;  %p3353_p0 = scmp.lt.s32.totalorder %s3936_s11, %s3351_s27 }
  0x1a   : > { %v350_v14 = vand.u32 4294901760, %v3664_v0  ;;  %v357_v15 = vand.u32 4294901760, %v3682_v7  ;;  %v364_v18 = vand.u32 4294901760, %v3687_v9  ;;  %v3721_v1 = vsub.f32 %v3547_v20, %v246_v25  ;;  %p3349_p13 = pneg %p3348_p12  ;;  %p3354_p1 = scmp.lt.s32.totalorder %s3352_s28, %s3346_s19 }
  0x1b   : > { %v3591_v33 = vsub.f32 %v3555_v22, %v3574_v27  ;;  %v3593_v34 = vand.u32 4294901760, %v902_v28  ;;  %2898 = vmatpush3.bf16.msra.mxu0 %v3535_v16  ;;  %3090 = vmatpush3.bf16.msra.mxu1 %v3535_v16  ;;  %v3605_v39 = vand.u32 4294901760, %v903_v32  ;;  %v3644_v55 = vsub.f32 %v3557_v23, %v3603_v38 }
  0x1c   : > { %2900 = vmatprep.subr.bf16.mxu0 %v3565_v24  ;;  %3092 = vmatprep.subr.bf16.mxu1 %v3565_v24  ;;  %v3738_v20 = vsub.f32 %v216_v49, %v264_v62  ;;  %p3355_p2 = por %p3354_p1, %p3353_p0 }
  0x1d   : > { %v3992_v43 = vand.u32 4294901760, %v3591_v33  ;;  %v3621_v44 = vsub.f32 %v902_v28, %v3593_v34  ;;  %v3647_v56 = vsub.f32 %v903_v32, %v3605_v39  ;;  %v3990_v5 = vand.u32 4294901760, %v3644_v55 }
  0x1e   : > { %v3693_v28 = vpack.c.bf16 %v264_v62, %v261_v61  ;;  %v324_v32 = vand.u32 4294901760, %v323_v63  ;;  %v3716_v63 = vsub.f32 %v3542_v19, %v243_v21  ;;  %v427_v62 = vand.u32 4294901760, %v3738_v20  ;;  %p3356_p3 = pnand %p3355_p2, %p3349_p13 }
  0x1f   : > { %v302_v50 = vsub.f32 %v3591_v33, %v3992_v43  ;;  %v3991_v51 = vand.u32 4294901760, %v3621_v44  ;;  %2902 = vmatpush3.bf16.msra.mxu0 %v3565_v24  ;;  %3094 = vmatpush3.bf16.msra.mxu1 %v3565_v24  ;;  %v3989_v6 = vand.u32 4294901760, %v3647_v56  ;;  %v312_v17 = vsub.f32 %v3644_v55, %v3990_v5 }
  0x20   : > { %2904 = vmatprep.subr.bf16.mxu0 %v3613_v40  ;;  %3096 = vmatprep.subr.bf16.mxu1 %v3613_v40  ;;  %v3735_v5 = vsub.f32 %v215_v48, %v261_v61  ;;  %v2919_v19 = vpack.c.bf16 %v331_v12, %v324_v32  ;;  %v3759_v32 = vpack.c.bf16 %v329_v47, %v322_v46 }
  0x21   : > { %v303_v59 = vand.u32 4294901760, %v302_v50  ;;  %v988_v60 = vsub.f32 %v3621_v44, %v3991_v51  ;;  %v338_v50 = vand.u32 4294901760, %v337_v3  ;;  %v3729_v3 = vsub.f32 %v3581_v29, %v252_v41 }
  0x22   : > { %v351_v51 = vsub.f32 %v3664_v0, %v350_v14  ;;  %v313_v25 = vand.u32 4294901760, %v312_v17  ;;  %v365_v29 = vsub.f32 %v3687_v9, %v364_v18  ;;  %v420_v61 = vand.u32 4294901760, %v3735_v5 }
  0x23   : > { %2469 = vmatprep.mubr.f32.mxu0 %v303_v59  ;;  %v989_v2 = vand.u32 4294901760, %v988_v60  ;;  %2906 = vmatpush3.bf16.msra.mxu0 %v3613_v40  ;;  %v345_v59 = vand.u32 4294901760, %v344_v4  ;;  %v998_v60 = vsub.f32 %v3647_v56, %v3989_v6  ;;  %v3731_v4 = vsub.f32 %v213_v42, %v255_v54 }
  0x24   : > { %3098 = vmatpush3.bf16.msra.mxu1 %v3613_v40  ;;  %2908 = vmatprep.subr.bf16.mxu0 %v3653_v57  ;;  %v3733_v6 = vsub.f32 %v214_v45, %v258_v58  ;;  %v378_v42 = vand.u32 4294901760, %v3716_v63  ;;  %v385_v45 = vand.u32 4294901760, %v3721_v1  ;;  %v399_v49 = vand.u32 4294901760, %v3729_v3 }
  0x25   : > { %3100 = vmatprep.subr.bf16.mxu1 %v3653_v57  ;;  %2679 = vmatprep.mubr.f32.mxu1 %v989_v2  ;;  %v3726_v2 = vsub.f32 %v3571_v26, %v249_v37  ;;  %v2923_v21 = vpack.c.bf16 %v345_v59, %v338_v50  ;;  %v358_v26 = vsub.f32 %v3682_v7, %v357_v15  ;;  %v371_v37 = vand.u32 4294901760, %v3698_v8 }
  0x26   : > { %v999_v41 = vand.u32 4294901760, %v998_v60  ;;  %v406_v54 = vand.u32 4294901760, %v3731_v4  ;;  %v413_v58 = vand.u32 4294901760, %v3733_v6  ;;  %v3765_v12 = vpack.c.bf16 %v343_v53, %v336_v52 }
  0x27   : > { %2910 = vmatpush3.bf16.msra.mxu0 %v3653_v57  ;;  %v392_v48 = vand.u32 4294901760, %v3726_v2  ;;  %v3767_v50 = vpack.c.bf16 %v357_v15, %v350_v14  ;;  %v352_v59 = vand.u32 4294901760, %v351_v51  ;;  %v372_v17 = vsub.f32 %v3698_v8, %v371_v37 }
  0x28   : > { %3102 = vmatpush3.bf16.msra.mxu1 %v3653_v57  ;;  %2912 = vmatprep.subr.bf16.mxu0 %v3691_v11  ;;  %v3772_v60 = vpack.c.bf16 %v371_v37, %v364_v18  ;;  %v3774_v43 = vpack.c.bf16 %v385_v45, %v378_v42  ;;  %v359_v46 = vand.u32 4294901760, %v358_v26  ;;  %v3778_v52 = vpack.c.bf16 %v413_v58, %v406_v54 }
  0x29   : > { %3104 = vmatprep.subr.bf16.mxu1 %v3691_v11  ;;  %v3776_v47 = vpack.c.bf16 %v399_v49, %v392_v48  ;;  %v3780_v53 = vpack.c.bf16 %v427_v62, %v420_v61  ;;  %v366_v51 = vand.u32 4294901760, %v365_v29  ;;  %v373_v15 = vand.u32 4294901760, %v372_v17 }
  0x2a   : > { %v2927_v14 = vpack.c.bf16 %v359_v46, %v352_v59  ;;  %v379_v18 = vsub.f32 %v3716_v63, %v378_v42  ;;  %v386_v37 = vsub.f32 %v3721_v1, %v385_v45  ;;  %v407_v17 = vsub.f32 %v3731_v4, %v406_v54 }
  0x2b   : > { %2914 = vmatpush3.bf16.msra.mxu0 %v3691_v11 }
  0x2c   : > { %3106 = vmatpush3.bf16.msra.mxu1 %v3691_v11  ;;  %2916 = vmatprep.subr.bf16.mxu0 %v3693_v28  ;;  %v380_v26 = vand.u32 4294901760, %v379_v18  ;;  %v387_v29 = vand.u32 4294901760, %v386_v37  ;;  %v2959_v37 = vpack.c.bf16 %v3682_v7, %v3664_v0  ;;  %v2979_v0 = vpack.c.bf16 %v3738_v20, %v3735_v5 }
  0x2d   : > { %3108 = vmatprep.subr.bf16.mxu1 %v3693_v28 }
  0x2e   : > { %v2935_v45 = vpack.c.bf16 %v387_v29, %v380_v26 }
  0x2f   : > { %2918 = vmatpush3.bf16.msra.mxu0 %v3693_v28 }
  0x30   : > { %3110 = vmatpush3.bf16.msra.mxu1 %v3693_v28  ;;  %2920 = vmatprep.subr.bf16.mxu0 %v2919_v19 }
  0x31   : > { %3112 = vmatprep.subr.bf16.mxu1 %v2919_v19 }
  0x32   : > { %2470 = vmatmul.mubr.f32.vlgmr.msra.gmra.mrb[0].mxu0 %v313_v25  ;;  %v393_v25 = vsub.f32 %v3726_v2, %v392_v48  ;;  %v421_v48 = vsub.f32 %v3735_v5, %v420_v61  ;;  %v2951_v61 = vpack.c.bf16 %v3585_v31, %v3583_v30  ;;  %v2963_v30 = vpack.c.bf16 %v3698_v8, %v3687_v9 }
  0x33   : > { %2680 = vmatmul.mubr.f32.vlgmr.msra.gmra.mrb[0].mxu1 %v999_v41  ;;  %2922 = vmatpush3.bf16.msra.mxu0 %v2919_v19  ;;  %v400_v41 = vsub.f32 %v3729_v3, %v399_v49  ;;  %v2967_v31 = vpack.c.bf16 %v3721_v1, %v3716_v63  ;;  %v3995_v5 = vand.u32 4294901760, %v3591_v33 }
  0x34   : > { %3114 = vmatpush3.bf16.msra.mxu1 %v2919_v19  ;;  %2924 = vmatprep.subr.bf16.mxu0 %v2923_v21  ;;  %v2931_v19 = vpack.c.bf16 %v373_v15, %v366_v51  ;;  %v394_v42 = vand.u32 4294901760, %v393_v25  ;;  %v408_v51 = vand.u32 4294901760, %v407_v17  ;;  %v422_v18 = vand.u32 4294901760, %v421_v48 }
  0x35   : > { %3116 = vmatprep.subr.bf16.mxu1 %v2923_v21  ;;  %2504 = vmatprep.mubr.f32.mxu0 %v3574_v27  ;;  %v401_v59 = vand.u32 4294901760, %v400_v41 }
  0x36   : > { %2714 = vmatprep.mubr.f32.mxu1 %v3593_v34 }
  0x37   : > { %2926 = vmatpush3.bf16.msra.mxu0 %v2923_v21  ;;  %v2939_v46 = vpack.c.bf16 %v401_v59, %v394_v42 }
  0x38   : > { %3118 = vmatpush3.bf16.msra.mxu1 %v2923_v21  ;;  %2928 = vmatprep.subr.bf16.mxu0 %v2927_v14  ;;  %v414_v21 = vsub.f32 %v3733_v6, %v413_v58 }
  0x39   : > { %3120 = vmatprep.subr.bf16.mxu1 %v2927_v14 }
  0x3a   : > { %v415_v49 = vand.u32 4294901760, %v414_v21  ;;  %v2196_v21 = vld [vmem:[%s3985_s1] ss:$0 sm:$0xff] }
  0x3b   : > { %2930 = vmatpush3.bf16.msra.mxu0 %v2927_v14 }
  0x3c   : > { %3122 = vmatpush3.bf16.msra.mxu1 %v2927_v14  ;;  %2932 = vmatprep.subr.bf16.mxu0 %v2931_v19  ;;  %v428_v14 = vsub.f32 %v3738_v20, %v427_v62  ;;  %v2943_v15 = vpack.c.bf16 %v415_v49, %v408_v51  ;;  %v2955_v62 = vpack.c.bf16 %v3597_v36, %v3595_v35 }
  0x3d   : > { %3124 = vmatprep.subr.bf16.mxu1 %v2931_v19  ;;  %v2971_v35 = vpack.c.bf16 %v3729_v3, %v3726_v2  ;;  %v2975_v36 = vpack.c.bf16 %v3733_v6, %v3731_v4  ;;  %v3996_v6 = vand.u32 4294901760, %v3621_v44 }
  0x3e   : > { %v429_v54 = vand.u32 4294901760, %v428_v14 }
  0x3f   : > { %2934 = vmatpush3.bf16.msra.mxu0 %v2931_v19 }
  0x40   : > { %3126 = vmatpush3.bf16.msra.mxu1 %v2931_v19  ;;  %2936 = vmatprep.subr.bf16.mxu0 %v2935_v45  ;;  %v2947_v58 = vpack.c.bf16 %v429_v54, %v422_v18 }
  0x41   : > { %3128 = vmatprep.subr.bf16.mxu1 %v2935_v45 }
  0x43   : > { %2938 = vmatpush3.bf16.msra.mxu0 %v2935_v45 }
  0x44   : > { %3130 = vmatpush3.bf16.msra.mxu1 %v2935_v45  ;;  %2940 = vmatprep.subr.bf16.mxu0 %v2939_v46 }
  0x45   : > { %3132 = vmatprep.subr.bf16.mxu1 %v2939_v46 }
  0x47   : > { %2942 = vmatpush3.bf16.msra.mxu0 %v2939_v46 }
  0x48   : > { %3134 = vmatpush3.bf16.msra.mxu1 %v2939_v46  ;;  %2944 = vmatprep.subr.bf16.mxu0 %v2943_v15 }
  0x49   : > { %3136 = vmatprep.subr.bf16.mxu1 %v2943_v15 }
  0x4b   : > { %2946 = vmatpush3.bf16.msra.mxu0 %v2943_v15 }
  0x4c   : > { %3138 = vmatpush3.bf16.msra.mxu1 %v2943_v15  ;;  %2948 = vmatprep.subr.bf16.mxu0 %v2947_v58 }
  0x4d   : > { %3140 = vmatprep.subr.bf16.mxu1 %v2947_v58 }
  0x4f   : > { %2950 = vmatpush3.bf16.msra.mxu0 %v2947_v58 }
  0x50   : > { %3142 = vmatpush3.bf16.msra.mxu1 %v2947_v58  ;;  %2952 = vmatprep.subr.bf16.mxu0 %v2951_v61 }
  0x51   : > { %3144 = vmatprep.subr.bf16.mxu1 %v2951_v61 }
  0x52   : > { %2505 = vmatmul.mubr.f32.vlgmr.msra.gmra.mrb[0].mxu0 %v3603_v38 }
  0x53   : > { %2715 = vmatmul.mubr.f32.vlgmr.msra.gmra.mrb[0].mxu1 %v3605_v39  ;;  %2954 = vmatpush3.bf16.msra.mxu0 %v2951_v61 }
  0x54   : > { %3146 = vmatpush3.bf16.msra.mxu1 %v2951_v61  ;;  %2956 = vmatprep.subr.bf16.mxu0 %v2955_v62 }
  0x55   : > { %3148 = vmatprep.subr.bf16.mxu1 %v2955_v62  ;;  %2539 = vmatprep.mubr.f32.mxu0 %v3591_v33  ;;  %v3997_v33 = vand.u32 4294901760, %v3644_v55 }
  0x56   : > { %2749 = vmatprep.mubr.f32.mxu1 %v3621_v44  ;;  %v3998_v44 = vand.u32 4294901760, %v3647_v56 }
  0x57   : > { %2958 = vmatpush3.bf16.msra.mxu0 %v2955_v62 }
  0x58   : > { %3150 = vmatpush3.bf16.msra.mxu1 %v2955_v62  ;;  %2960 = vmatprep.subr.bf16.mxu0 %v2959_v37 }
  0x59   : > { %3152 = vmatprep.subr.bf16.mxu1 %v2959_v37 }
  0x5b   : > { %2962 = vmatpush3.bf16.msra.mxu0 %v2959_v37 }
  0x5c   : > { %3154 = vmatpush3.bf16.msra.mxu1 %v2959_v37  ;;  %2964 = vmatprep.subr.bf16.mxu0 %v2963_v30 }
  0x5d   : > { %3156 = vmatprep.subr.bf16.mxu1 %v2963_v30 }
  0x5f   : > { %2966 = vmatpush3.bf16.msra.mxu0 %v2963_v30 }
  0x60   : > { %3158 = vmatpush3.bf16.msra.mxu1 %v2963_v30  ;;  %2968 = vmatprep.subr.bf16.mxu0 %v2967_v31 }
  0x61   : > { %3160 = vmatprep.subr.bf16.mxu1 %v2967_v31 }
  0x63   : > { %2970 = vmatpush3.bf16.msra.mxu0 %v2967_v31 }
  0x64   : > { %3162 = vmatpush3.bf16.msra.mxu1 %v2967_v31  ;;  %2972 = vmatprep.subr.bf16.mxu0 %v2971_v35 }
  0x65   : > { %3164 = vmatprep.subr.bf16.mxu1 %v2971_v35 }
  0x67   : > { %2974 = vmatpush3.bf16.msra.mxu0 %v2971_v35 }
  0x68   : > { %3166 = vmatpush3.bf16.msra.mxu1 %v2971_v35  ;;  %2976 = vmatprep.subr.bf16.mxu0 %v2975_v36 }
  0x69   : > { %3168 = vmatprep.subr.bf16.mxu1 %v2975_v36 }
  0x6b   : > { %2978 = vmatpush3.bf16.msra.mxu0 %v2975_v36 }
  0x6c   : > { %3170 = vmatpush3.bf16.msra.mxu1 %v2975_v36  ;;  %2980 = vmatprep.subr.bf16.mxu0 %v2979_v0 }
  0x6d   : > { %3172 = vmatprep.subr.bf16.mxu1 %v2979_v0 }
  0x6f   : > { %2982 = vmatpush3.bf16.msra.mxu0 %v2979_v0 }
  0x70   : > { %3174 = vmatpush3.bf16.msra.mxu1 %v2979_v0  ;;  %2984 = vmatprep.subr.bf16.mxu0 %v3509_v10 }
  0x71   : > { %3176 = vmatprep.subr.bf16.mxu1 %v3509_v10 }
  0x72   : > { %2540 = vmatmul.mubr.f32.vlgmr.msra.gmra.mrb[0].mxu0 %v3644_v55 }
  0x73   : > { %2750 = vmatmul.mubr.f32.vlgmr.msra.gmra.mrb[0].mxu1 %v3647_v56  ;;  %2986 = vmatpush3.bf16.msra.mxu0 %v3509_v10 }
  0x74   : > { %3178 = vmatpush3.bf16.msra.mxu1 %v3509_v10  ;;  %2988 = vmatprep.subr.bf16.mxu0 %v3513_v13 }
  0x75   : > { %3180 = vmatprep.subr.bf16.mxu1 %v3513_v13  ;;  %2574 = vmatprep.mubr.f32.mxu0 %v3995_v5 }
  0x76   : > { %2784 = vmatprep.mubr.f32.mxu1 %v3996_v6 }
  0x77   : > { %2990 = vmatpush3.bf16.msra.mxu0 %v3513_v13 }
  0x78   : > { %3182 = vmatpush3.bf16.msra.mxu1 %v3513_v13  ;;  %2992 = vmatprep.subr.bf16.mxu0 %v3535_v16 }
  0x79   : > { %3184 = vmatprep.subr.bf16.mxu1 %v3535_v16 }
  0x7b   : > { %2994 = vmatpush3.bf16.msra.mxu0 %v3535_v16 }
  0x7c   : > { %3186 = vmatpush3.bf16.msra.mxu1 %v3535_v16  ;;  %2996 = vmatprep.subr.bf16.mxu0 %v3565_v24 }
  0x7d   : > { %3188 = vmatprep.subr.bf16.mxu1 %v3565_v24 }
  0x7f   : > { %2998 = vmatpush3.bf16.msra.mxu0 %v3565_v24 }
  0x80   : > { %3190 = vmatpush3.bf16.msra.mxu1 %v3565_v24  ;;  %3000 = vmatprep.subr.bf16.mxu0 %v3613_v40 }
  0x81   : > { %3192 = vmatprep.subr.bf16.mxu1 %v3613_v40 }
  0x83   : > { %3002 = vmatpush3.bf16.msra.mxu0 %v3613_v40 }
  0x84   : > { %3194 = vmatpush3.bf16.msra.mxu1 %v3613_v40  ;;  %3004 = vmatprep.subr.bf16.mxu0 %v3653_v57 }
  0x85   : > { %3196 = vmatprep.subr.bf16.mxu1 %v3653_v57 }
  0x87   : > { %3006 = vmatpush3.bf16.msra.mxu0 %v3653_v57 }
  0x88   : > { %3198 = vmatpush3.bf16.msra.mxu1 %v3653_v57  ;;  %3008 = vmatprep.subr.bf16.mxu0 %v3691_v11 }
  0x89   : > { %3200 = vmatprep.subr.bf16.mxu1 %v3691_v11 }
  0x8b   : > { %3010 = vmatpush3.bf16.msra.mxu0 %v3691_v11 }
  0x8c   : > { %3202 = vmatpush3.bf16.msra.mxu1 %v3691_v11  ;;  %3012 = vmatprep.subr.bf16.mxu0 %v3693_v28 }
  0x8d   : > { %3204 = vmatprep.subr.bf16.mxu1 %v3693_v28 }
  0x8f   : > { %3014 = vmatpush3.bf16.msra.mxu0 %v3693_v28 }
  0x90   : > { %3206 = vmatpush3.bf16.msra.mxu1 %v3693_v28  ;;  %3016 = vmatprep.subr.bf16.mxu0 %v3759_v32 }
  0x91   : > { %3208 = vmatprep.subr.bf16.mxu1 %v3759_v32 }
  0x92   : > { %2575 = vmatmul.mubr.f32.vlgmr.msra.gmra.mrb[0].mxu0 %v3997_v33 }
  0x93   : > { %2785 = vmatmul.mubr.f32.vlgmr.msra.gmra.mrb[0].mxu1 %v3998_v44  ;;  %3018 = vmatpush3.bf16.msra.mxu0 %v3759_v32 }
  0x94   : > { %3210 = vmatpush3.bf16.msra.mxu1 %v3759_v32  ;;  %3020 = vmatprep.subr.bf16.mxu0 %v3765_v12 }
  0x95   : > { %3212 = vmatprep.subr.bf16.mxu1 %v3765_v12  ;;  %2609 = vmatprep.mubr.f32.mxu0 %v3574_v27 }
  0x96   : > { %2819 = vmatprep.mubr.f32.mxu1 %v3593_v34 }
  0x97   : > { %3022 = vmatpush3.bf16.msra.mxu0 %v3765_v12 }
  0x98   : > { %3214 = vmatpush3.bf16.msra.mxu1 %v3765_v12  ;;  %3024 = vmatprep.subr.bf16.mxu0 %v3767_v50 }
  0x99   : > { %3216 = vmatprep.subr.bf16.mxu1 %v3767_v50 }
  0x9b   : > { %3026 = vmatpush3.bf16.msra.mxu0 %v3767_v50 }
  0x9c   : > { %3218 = vmatpush3.bf16.msra.mxu1 %v3767_v50  ;;  %3028 = vmatprep.subr.bf16.mxu0 %v3772_v60 }
  0x9d   : > { %3220 = vmatprep.subr.bf16.mxu1 %v3772_v60 }
  0x9f   : > { %3030 = vmatpush3.bf16.msra.mxu0 %v3772_v60 }
  0xa0   : > { %3222 = vmatpush3.bf16.msra.mxu1 %v3772_v60  ;;  %3032 = vmatprep.subr.bf16.mxu0 %v3774_v43 }
  0xa1   : > { %3224 = vmatprep.subr.bf16.mxu1 %v3774_v43 }
  0xa3   : > { %3034 = vmatpush3.bf16.msra.mxu0 %v3774_v43 }
  0xa4   : > { %3226 = vmatpush3.bf16.msra.mxu1 %v3774_v43  ;;  %3036 = vmatprep.subr.bf16.mxu0 %v3776_v47 }
  0xa5   : > { %3228 = vmatprep.subr.bf16.mxu1 %v3776_v47 }
  0xa7   : > { %3038 = vmatpush3.bf16.msra.mxu0 %v3776_v47 }
  0xa8   : > { %3230 = vmatpush3.bf16.msra.mxu1 %v3776_v47  ;;  %3040 = vmatprep.subr.bf16.mxu0 %v3778_v52 }
  0xa9   : > { %3232 = vmatprep.subr.bf16.mxu1 %v3778_v52 }
  0xab   : > { %3042 = vmatpush3.bf16.msra.mxu0 %v3778_v52 }
  0xac   : > { %3234 = vmatpush3.bf16.msra.mxu1 %v3778_v52  ;;  %3044 = vmatprep.subr.bf16.mxu0 %v3780_v53 }
  0xad   : > { %3236 = vmatprep.subr.bf16.mxu1 %v3780_v53 }
  0xaf   : > { %3046 = vmatpush3.bf16.msra.mxu0 %v3780_v53 }
  0xb0   : > { %3238 = vmatpush3.bf16.msra.mxu1 %v3780_v53  ;;  %3048 = vmatprep.subr.bf16.mxu0 %v3509_v10 }
  0xb1   : > { %3240 = vmatprep.subr.bf16.mxu1 %v3509_v10 }
  0xb2   : > { %2610 = vmatmul.mubr.f32.vlgmr.msra.gmra.mrb[0].mxu0 %v3603_v38 }
  0xb3   : > { %2820 = vmatmul.mubr.f32.vlgmr.msra.gmra.mrb[0].mxu1 %v3605_v39  ;;  %3050 = vmatpush3.bf16.msra.mxu0 %v3509_v10 }
  0xb4   : > { %3242 = vmatpush3.bf16.msra.mxu1 %v3509_v10  ;;  %3052 = vmatprep.subr.bf16.mxu0 %v3513_v13  ;;  %v217_v10 = vld [vmem:[%s3987_s3] sm:$0xf] }
  0xb5   : > { %3244 = vmatprep.subr.bf16.mxu1 %v3513_v13  ;;  %2644 = vmatprep.mubr.f32.mxu0 %v3574_v27 }
  0xb6   : > { %2854 = vmatprep.mubr.f32.mxu1 %v3593_v34 }
  0xb7   : > { %3054 = vmatpush3.bf16.msra.mxu0 %v3513_v13 }
  0xb8   : > { %3246 = vmatpush3.bf16.msra.mxu1 %v3513_v13  ;;  %3056 = vmatprep.subr.bf16.mxu0 %v3535_v16  ;;  %v1609_v13 = vsel %vm1607_vm0, %v217_v10, 0 }
  0xb9   : > { %3248 = vmatprep.subr.bf16.mxu1 %v3535_v16 }
  0xbb   : > { %3058 = vmatpush3.bf16.msra.mxu0 %v3535_v16 }
  0xbc   : > { %3250 = vmatpush3.bf16.msra.mxu1 %v3535_v16  ;;  %3060 = vmatprep.subr.bf16.mxu0 %v3565_v24  ;;  %v1612_v16 = vand.u32 4294901760, %v1609_v13 }
  0xbd   : > { %3252 = vmatprep.subr.bf16.mxu1 %v3565_v24 }
  0xbf   : > { %3062 = vmatpush3.bf16.msra.mxu0 %v3565_v24 }
  0xc0   : > { %3254 = vmatpush3.bf16.msra.mxu1 %v3565_v24  ;;  %3064 = vmatprep.subr.bf16.mxu0 %v3613_v40  ;;  %v1699_v24 = vsub.f32 %v1609_v13, %v1612_v16 }
  0xc1   : > { %3256 = vmatprep.subr.bf16.mxu1 %v3613_v40 }
  0xc2   : > { %v1700_v27 = vand.u32 4294901760, %v1699_v24 }
  0xc3   : > { %3066 = vmatpush3.bf16.msra.mxu0 %v3613_v40 }
  0xc4   : > { %3258 = vmatpush3.bf16.msra.mxu1 %v3613_v40  ;;  %3068 = vmatprep.subr.bf16.mxu0 %v3653_v57  ;;  %v1701_v34 = vsub.f32 %v1699_v24, %v1700_v27 }
  0xc5   : > { %3260 = vmatprep.subr.bf16.mxu1 %v3653_v57 }
  0xc6   : > { %v1702_v40 = vand.u32 4294901760, %v1701_v34 }
  0xc7   : > { %3070 = vmatpush3.bf16.msra.mxu0 %v3653_v57 }
  0xc8   : > { %3262 = vmatpush3.bf16.msra.mxu1 %v3653_v57  ;;  %3072 = vmatprep.subr.bf16.mxu0 %v3691_v11 }
  0xc9   : > { %3264 = vmatprep.subr.bf16.mxu1 %v3691_v11 }
  0xcb   : > { %3074 = vmatpush3.bf16.msra.mxu0 %v3691_v11 }
  0xcc   : > { %3266 = vmatpush3.bf16.msra.mxu1 %v3691_v11  ;;  %3076 = vmatprep.subr.bf16.mxu0 %v3693_v28 }
  0xcd   : > { %3268 = vmatprep.subr.bf16.mxu1 %v3693_v28 }
  0xcf   : > { %3078 = vmatpush3.bf16.msra.mxu0 %v3693_v28 }
  0xd0   : > { %3270 = vmatpush3.bf16.msra.mxu1 %v3693_v28  ;;  %2872 = vmatprep.subr.mxu0 %v1612_v16 }
  0xd1   : > { %2857 = vmatprep.subr.mxu1 %v1612_v16 }
  0xd2   : > { %2645 = vmatmul.mubr.f32.vlgmr.msra.gmra.mrb[0].mxu0 %v3603_v38 }
  0xd3   : > { %2855 = vmatmul.mubr.f32.vlgmr.msra.gmra.mrb[0].mxu1 %v3605_v39  ;;  %2873 = vmatpush3.msra.mxu0 %v1612_v16 }
  0xd4   : > { %2858 = vmatpush3.msra.mxu1 %v1612_v16  ;;  %2877 = vmatprep.subr.mxu0 %v1700_v27 }
  0xd5   : > { %2862 = vmatprep.subr.mxu1 %v1702_v40 }
 0x1a5   : > { %v2646_v38 = vpop.f32.mrb[0].mxu0 }
 0x1a6   : > { %v2856_v43 = vpop.f32.mrb[0].mxu1  ;;  %v1589_v39 = vmul.f32 0.03125, %v2646_v38  ;;  %v892_v55 = vpop.f32.mrb[1].mxu0 }
 0x1a7   : > { %v1578_v56 = vpop.f32.mrb[1].mxu1  ;;  %v1588_v57 = vmul.f32 0.03125, %v892_v55  ;;  %v1591_v9 = vmul.f32 0.03125, %v2856_v43 }
 0x1a8   : > { %v1593_v7 = vmul.f32 %v1589_v39, %v1589_v39  ;;  %v1590_v28 = vmul.f32 0.03125, %v1578_v56 }
 0x1a9   : > { %v1592_v11 = vmul.f32 %v1588_v57, %v1588_v57 }
 0x1aa   : > { %v1595_v8 = vsub.f32 %v1591_v9, %v1593_v7 }
 0x1ab   : > { %v1594_v63 = vsub.f32 %v1590_v28, %v1592_v11 }
 0x1ac   : > { %v1597_v1 = vadd.f32 1e-05, %v1595_v8 }
 0x1ad   : > { %v1596_v2 = vadd.f32 1e-05, %v1594_v63 }
 0x1ae   : > { %3342 = vrsqrt.f32 %v1597_v1 }
 0x1af   : > { %3344 = vrsqrt.f32 %v1596_v2 }
 0x1b8   : > { %v3343_v3 = vpop.eup %3342 }
 0x1b9   : > { %v3345_v4 = vpop.eup %3344  ;;  %v1605_v20 = vsel %vm1600_vm1, %v3343_v3, 0 }
 0x1ba   : > { %v1602_v32 = vsel %vm1600_vm1, %v3345_v4, 0  ;;  %v1687_v12 = vand.u32 4294901760, %v1605_v20 }
 0x1bb   : > { %v1677_v50 = vand.u32 4294901760, %v1602_v32 }
 0x1bc   : > { %v1688_v60 = vsub.f32 %v1605_v20, %v1687_v12 }
 0x1bd   : > { %v1678_v47 = vsub.f32 %v1602_v32, %v1677_v50 }
 0x1be   : > { %v1689_v52 = vand.u32 4294901760, %v1688_v60 }
 0x1bf   : > { %v1679_v53 = vand.u32 4294901760, %v1678_v47 }
 0x1c0   : > { %v1690_v25 = vsub.f32 %v1688_v60, %v1689_v52 }
 0x1c1   : > { %2874 = vmatprep.mubr.f32.mxu0 %v1679_v53  ;;  %v1680_v19 = vsub.f32 %v1678_v47, %v1679_v53 }
 0x1c2   : > { %2875 = vmatmul.mubr.f32.vlgmr.msra.gmra.mrb[2].mxu0 %v1689_v52  ;;  %v1691_v29 = vand.u32 4294901760, %v1690_v25 }
 0x1c3   : > { %2879 = vmatprep.mubr.f32.mxu0 %v1677_v50  ;;  %v1681_v26 = vand.u32 4294901760, %v1680_v19  ;;  %2878 = vmatpush3.msra.mxu0 %v1700_v27 }
 0x1c4   : > { %2882 = vmatprep.subr.mxu0 %v1612_v16 }
 0x1c5   : > { %2859 = vmatprep.mubr.f32.mxu1 %v1681_v26 }
 0x1c6   : > { %2860 = vmatmul.mubr.f32.vlgmr.msra.gmra.mrb[2].mxu1 %v1691_v29 }
 0x1c7   : > { %2863 = vmatpush3.msra.mxu1 %v1702_v40  ;;  %2864 = vmatprep.mubr.f32.mxu1 %v1677_v50 }
 0x1c8   : > { %2867 = vmatprep.subr.mxu1 %v1699_v24 }
 0x1ca   : > { %2880 = vmatmul.mubr.f32.vlgmr.msra.gmra.mrb[2].mxu0 %v1687_v12 }
 0x1cb   : > { %2884 = vmatprep.mubr.f32.mxu0 %v1677_v50  ;;  %2883 = vmatpush3.msra.mxu0 %v1612_v16 }
 0x1ce   : > { %2865 = vmatmul.mubr.f32.vlgmr.msra.gmra.mrb[2].mxu1 %v1687_v12 }
 0x1cf   : > { %2868 = vmatpush3.msra.mxu1 %v1699_v24  ;;  %2869 = vmatprep.mubr.f32.mxu1 %v1678_v47 }
 0x1d2   : > { %2885 = vmatmul.mubr.f32.vlgmr.msra.gmra.mrb[2].mxu0 %v1687_v12 }
 0x1d6   : > { %2870 = vmatmul.mubr.f32.vlgmr.msra.gmra.mrb[2].mxu1 %v1688_v60 }
 0x2a5   : > { %v2886_v41 = vpop.f32.mrb[2].mxu0 }
 0x2a6   : > { %v2090_v42 = vpop.f32.mrb[3].mxu0 }
 0x2a9   : > { %v2871_v45 = vpop.f32.mrb[2].mxu1 }
 0x2aa   : > { %v3271_v59 = vadd.f32 %v2886_v41, %v2871_v45  ;;  %v1849_v17 = vpop.f32.mrb[3].mxu1 }
 0x2ab   : > { %v3272_v48 = vadd.f32 %v2090_v42, %v1849_v17 }
 0x2ac   : > { %v2101_v46 = vmul.f32 %v3271_v59, %v3557_v23 }
 0x2ad   : > { %v2100_v51 = vmul.f32 %v3272_v48, %v3555_v22 }
 0x2ae   : > { %v2110_v49 = vmul.f32 %v2196_v21, %v2101_v46 }
 0x2af   : > { %v2109_v14 = vmul.f32 %v2196_v21, %v2100_v51 }
 0x2b0   : > { %2112 = vst [vmem:[%s191_s10 + $0x8] sm:$0xff] %v2110_v49 }
 0x2b1   : > { %2111 = vst [vmem:[%s191_s10] sm:$0xff] %v2109_v14 }
 0x2b2   : > { %3359 = shalt.err (!%p3356_p3)
}
 0x2b3   : > { %s3360_s29 = scalar_lea.hbm %s3941_s20, 256  ;;  %s3364_s6 = scalar_lea.hbm %s3988_s4, 512 }
 0x2b4   : > { %p3361_p4 = scmp.ne.s32.totalorder %s3941_s20, %s3360_s29  ;;  %p3365_p9 = scmp.lt.u32.totalorder %s3941_s20, %s3988_s4 }
 0x2b5   : > { %p3366_p10 = scmp.lt.u32.totalorder %s3364_s6, %s3360_s29  ;;  %p3368_p12 = scmp.lt.u32.totalorder %s3360_s29, %s3941_s20 }
 0x2b6   : > { %p3362_p7 = pnand %p3361_p4, %p3476_p5 }
 0x2b7   : > { %p3367_p11 = por %p3366_p10, %p3365_p9 }
 0x2b8   : > { %p3363_p8 = pneg %p3362_p7 }
 0x2b9   : > { %p3369_p13 = por %p3368_p12, %p3367_p11 }
 0x2bb   : > { %p3370_p0 = pnand %p3369_p13, %p3363_p8 }
 0x2bd   : > { %3373 = shalt.err (!%p3370_p0)
}
 0x2be   : > { %s3411_s7 = smov 128   ;;  %s3412_s10 = smov 8  }
 0x2bf   : > { %3301 = dma.vmem_to_hbm [thread:$0]  (%p3476_p5), %s3936_s11, 256, %s3941_s20, %s3943_s22, %s3411_s7, %s3411_s7, %s3412_s10  }
 0x2c0 PF: > { %p3307_p1 = scmp.ge.s32.totalorder %s3408_s18, 2  ;;  %s2142_s12 = sand.u32 1, %s3396_s15  }
 0x2c1   : > { %s2143_s13 = scalar_lea.sflag [#allocation3], %s2142_s12 }
 0x2c2   : > { %p3304_p2 = pnand %p3307_p1, %p3480_p6 }
 0x2c4   : > { %3391 = dma.done.wait (!%p3304_p2), %s2143_s13, 256  }
 0x2c5   : > { %3393 = vsyncadd (!%p3304_p2), %s2143_s13, 4294967040  ;;  %p14_p3 = scmp.ge.s32.totalorder %s3463_s21, 4   ;;  %s3999_s15 = smov %s3400_s16 }
 0x2c6   : > { %s4000_s16 = smov %s3404_s17  ;;  %s4001_s17 = smov %s3474_s24 }
 0x2c7   : > { %s4002_s18 = smov %s3463_s21  ;;  %16 = sbr.rel (!%p14_p3) target bundleno = 3 (0x3), region = 71 }
 0x2ce   :  { %2148 = vsyncpa [#allocation3], 1 }
 0x2cf   :  { %2150 = vsyncpa [#allocation3 + $0x1], 1 }

</bundles_post_ra>
